<compile_context>
chip_gen: v7x
topology: tpu7x:2x2x1
jax: 0.10.0
libtpu: 0.0.40
codegen_flags: <defaults>
</compile_context>

<pallas_src>
import math

import jax
import jax.numpy as jnp
from jax.experimental import pallas as pl
from jax.experimental.pallas import tpu as pltpu


# ------------------------- PE table (built once, plain JAX) -------------------------

def _build_pe(d_model: int, max_len: int = 20) -> jnp.ndarray:
    """Deterministic sin/cos positional-encoding table, matching the PyTorch init."""
    if d_model % 2 != 0:
        # The PyTorch reference also fails for odd d_model (slice-assign mismatch).
        raise ValueError(f"d_model must be even, got {d_model}")
    position = jnp.arange(max_len, dtype=jnp.float32)[:, None]                 # (max_len, 1)
    div_term = jnp.exp(
        jnp.arange(0, d_model, 2, dtype=jnp.float32)
        * (-math.log(10000.0) / d_model)
    )                                                                           # (d_model//2,)
    sin = jnp.sin(position * div_term)                                          # (max_len, d//2)
    cos = jnp.cos(position * div_term)                                          # (max_len, d//2)
    # interleave: pe[:, 0::2] = sin, pe[:, 1::2] = cos
    pe = jnp.stack([sin, cos], axis=-1).reshape(max_len, d_model)
    return pe


# ------------------------- tiling helpers -------------------------

# ~4 MiB per block buffer; double-buffered in+out => ~16 MiB, kept legal on all
# generations by explicitly requesting a 32 MiB scoped-VMEM budget (v5e default
# is only 16 MiB; v6e/v7x default is 32 MiB).
_TILE_TARGET_BYTES = 4 << 20
_VMEM_LIMIT_BYTES = 32 * 1024 * 1024


def _sublane_gran(min_itemsize: int) -> int:
    """Sublane packing granularity: 8 for 4-byte, 16 for 2-byte, 32 for 1-byte dtypes."""
    return max(8, 32 // max(1, min_itemsize))


def _lane_fold(d: int, rows: int) -> int:
    """Fold factor g so the last dim becomes g*d >= 128 lanes (lane-dense stores).
    Only when d divides 128 and g divides the folded axis length."""
    if d >= 128 or 128 % d != 0:
        return 1
    g = 128 // d                      # power of two
    while g > 1 and rows % g != 0:
        g //= 2
    return g


def _pick_batch_tile(n_rows: int, row_bytes: int, gran: int) -> int:
    """Tile for the (sublane) batch axis of a (T, bt, D) block."""
    budget_rows = (_TILE_TARGET_BYTES // max(1, row_bytes)) // gran * gran
    bt = min(max(gran, budget_rows), n_rows)
    # Keep >= 2 grid steps when legally splittable (feeds both v7x TensorCores).
    if bt >= n_rows and n_rows >= 2 * gran:
        half = (n_rows + 1) // 2
        bt = -(-half // gran) * gran
    return min(bt, n_rows)


def _pick_leading_tile(n: int, slab_bytes: int) -> int:
    """Tile for a leading (non-layout) axis: as many slabs as fit the budget,
    but at least 2 grid steps when possible (v7x megacore)."""
    bt = max(1, min(n, _TILE_TARGET_BYTES // max(1, slab_bytes)))
    if bt >= n and n >= 2:
        bt = (n + 1) // 2
    return bt


# ------------------------- Pallas kernels -------------------------

def _pe_add_time_major_kernel(x_ref, pe_ref, o_ref):
    # x/o block: (T, bt, D'); pe block: (T, D') resident in VMEM across the grid.
    x = x_ref[...].astype(jnp.float32)
    pe = pe_ref[...].astype(jnp.float32)
    o_ref[...] = (x + pe[:, None, :]).astype(o_ref.dtype)


def _pe_add_batch_major_kernel(x_ref, pe_ref, o_ref):
    # x/o block: (bt, T', D'); pe block: (T', D')
    x = x_ref[...].astype(jnp.float32)
    pe = pe_ref[...].astype(jnp.float32)
    o_ref[...] = (x + pe[None, :, :]).astype(o_ref.dtype)


# ------------------------- pallas_call wrappers -------------------------

def _cost(x, pe_slice, out_dtype):
    return pl.CostEstimate(
        flops=int(x.size),
        transcendentals=0,
        bytes_accessed=int(x.size * x.dtype.itemsize
                           + x.size * jnp.dtype(out_dtype).itemsize
                           + pe_slice.size * pe_slice.dtype.itemsize),
    )


def _add_pe_time_major(x, pe_slice):
    """x: (T, B, D), pe_slice: (T, D) float32 -> x + pe_slice[:, None, :]."""
    T, B, D = x.shape
    out_dtype = jnp.promote_types(x.dtype, pe_slice.dtype)
    g = _lane_fold(D, B)
    if g > 1:
        xk = x.reshape(T, B // g, g * D)          # contiguous reshape (free)
        pek = jnp.tile(pe_slice, (1, g))          # tiny (T, g*D) table
    else:
        xk, pek = x, pe_slice
    _, Bk, Dk = xk.shape

    itemsize = max(x.dtype.itemsize, jnp.dtype(out_dtype).itemsize)
    gran = _sublane_gran(min(x.dtype.itemsize, jnp.dtype(out_dtype).itemsize))
    bt = _pick_batch_tile(Bk, T * Dk * itemsize, gran)
    grid = (pl.cdiv(Bk, bt),)

    out = pl.pallas_call(
        _pe_add_time_major_kernel,
        out_shape=jax.ShapeDtypeStruct((T, Bk, Dk), out_dtype),
        grid=grid,
        in_specs=[
            pl.BlockSpec((T, bt, Dk), lambda b: (0, b, 0)),
            # full PE table; constant block index -> DMA'd once, stays in VMEM
            pl.BlockSpec((T, Dk), lambda b: (0, 0)),
        ],
        out_specs=pl.BlockSpec((T, bt, Dk), lambda b: (0, b, 0)),
        compiler_params=pltpu.CompilerParams(
            dimension_semantics=("parallel",),
            vmem_limit_bytes=_VMEM_LIMIT_BYTES,
        ),
        cost_estimate=_cost(x, pe_slice, out_dtype),
    )(xk, pek)
    return out.reshape(T, B, D) if g > 1 else out


def _add_pe_batch_major(x, pe_slice):
    """x: (B, T, D), pe_slice: (T, D) float32 -> x + pe_slice[None, :, :]."""
    B, T, D = x.shape
    out_dtype = jnp.promote_types(x.dtype, pe_slice.dtype)
    g = _lane_fold(D, T)
    if g > 1:
        xk = x.reshape(B, T // g, g * D)
        pek = pe_slice.reshape(T // g, g * D)     # contiguous reshape of the table
    else:
        xk, pek = x, pe_slice
    _, Tk, Dk = xk.shape

    itemsize = max(x.dtype.itemsize, jnp.dtype(out_dtype).itemsize)
    bt = _pick_leading_tile(B, Tk * Dk * itemsize)
    grid = (pl.cdiv(B, bt),)

    out = pl.pallas_call(
        _pe_add_batch_major_kernel,
        out_shape=jax.ShapeDtypeStruct((B, Tk, Dk), out_dtype),
        grid=grid,
        in_specs=[
            pl.BlockSpec((bt, Tk, Dk), lambda b: (b, 0, 0)),
            pl.BlockSpec((Tk, Dk), lambda b: (0, 0)),
        ],
        out_specs=pl.BlockSpec((bt, Tk, Dk), lambda b: (b, 0, 0)),
        compiler_params=pltpu.CompilerParams(
            dimension_semantics=("parallel",),
            vmem_limit_bytes=_VMEM_LIMIT_BYTES,
        ),
        cost_estimate=_cost(x, pe_slice, out_dtype),
    )(xk, pek)
    return out.reshape(B, T, D) if g > 1 else out


# ------------------------- Module wrapper -------------------------

class PositionalEncoding:
    """Pallas/JAX port of the PyTorch PositionalEncoding module."""

    def __init__(self, d_model: int, max_len: int = 20):
        self.d_model = d_model
        self.max_len = max_len
        self.pe = _build_pe(d_model, max_len)     # (max_len, d_model), float32
        self._pe_cache = {}                       # (mode, T, g) -> folded slice

    def _pe_time_major(self, T: int, g: int) -> jnp.ndarray:
        key = ("tm", T, g)
        if key not in self._pe_cache:
            self._pe_cache[key] = self.pe[:T, :]
        return self._pe_cache[key]

    def __call__(self, x: jnp.ndarray) -> jnp.ndarray:
        # Branch selection intentionally mirrors the PyTorch module (first branch
        # wins whenever the last dim equals d_model).
        if x.ndim == 3 and x.shape[2] == self.d_model:
            # (T, B, D): out = x + pe[:T][:, None, :]
            T = x.shape[0]
            if T > self.max_len:
                raise ValueError(
                    f"sequence length {T} exceeds max_len={self.max_len}")
            return _add_pe_time_major(x, self.pe[:T, :])
        elif x.ndim == 3 and x.shape[1] == self.d_model:
            # (B, T, D) with T == d_model: out = x + pe[:T][None, :, :]
            T = x.shape[1]
            if T > self.max_len:
                raise ValueError(
                    f"sequence length {T} exceeds max_len={self.max_len}")
            if x.shape[2] != self.d_model:
                # The PyTorch reference would fail this broadcast at runtime too.
                raise ValueError(
                    "last dim of x must equal d_model for the (B, T, D) branch")
            return _add_pe_batch_major(x, self.pe[:T, :])
        else:
            raise ValueError("Input shape not supported")


# ------------------------- Test / demo -------------------------

if __name__ == "__main__":
    key, key2, key3 = jax.random.split(jax.random.PRNGKey(0), 3)

    d_model = 32
    max_len = 20
    module = PositionalEncoding(d_model, max_len=max_len)

    # 1) (T, B, D) small: single block, no lane folding (B=2 not divisible by g)
    T, B = 8, 2
    x = jax.random.normal(key, (T, B, d_model), dtype=jnp.float32)
    out = jax.block_until_ready(module(x))
    ref = x + module.pe[:T, :][:, None, :]
    assert out.shape == x.shape
    assert jnp.allclose(out, ref, atol=1e-6), "mismatch vs reference (T,B,D)"

    # 2) (T, B, D) wider batch: lane-dense fold (D=32 -> g=4, last dim 128),
    #    full-T block, 2 parallel batch-tile grid steps.
    T2, B2 = max_len, 64
    x2 = jax.random.normal(key2, (T2, B2, d_model), dtype=jnp.float32)
    out2 = jax.block_until_ready(module(x2))
    ref2 = x2 + module.pe[:T2, :][:, None, :]
    assert jnp.allclose(out2, ref2, atol=1e-6), "mismatch vs reference (T,B,D) #2"

    # 3) bf16 input: PE stays float32, add in float32, output promoted to float32
    #    (matches PyTorch type promotion).
    x3 = jax.random.normal(key3, (T, B, d_model), dtype=jnp.bfloat16)
    out3 = jax.block_until_ready(module(x3))
    ref3 = x3 + module.pe[:T, :][:, None, :]
    assert out3.dtype == jnp.float32
    assert jnp.allclose(out3, ref3, atol=1e-6), "mismatch vs reference bf16"

    print("KERNEL_OK")
</pallas_src>

<mosaic_0001>
module attributes {stable_mosaic.version = 11 : i64} {
  func.func @_pe_add_time_major_kernel(%arg0: i32, %arg1: memref<8x1x64xf32, #tpu.memory_space<vmem>>, %arg2: memref<8x64xf32, #tpu.memory_space<vmem>>, %arg3: memref<8x1x64xf32, #tpu.memory_space<vmem>>) attributes {dimension_semantics = [#tpu.dimension_semantics<parallel>], iteration_bounds = array<i64: 1>, scalar_prefetch = 0 : i64, scratch_operands = 0 : i64, tpu.core_type = #tpu.core_type<tc>, window_params = [{transform_indices = @transform_0, window_bounds = array<i64: 8, 1, 64>}, {pipeline_mode = #tpu.pipeline_mode<synchronous>, transform_indices = @transform_1, window_bounds = array<i64: 8, 64>}, {transform_indices = @transform_2, window_bounds = array<i64: 8, 1, 64>}]} {
    %c0 = arith.constant 0 : index
    %c0_0 = arith.constant 0 : index
    %c0_1 = arith.constant 0 : index
    %0 = vector.load %arg1[%c0, %c0_0, %c0_1] : memref<8x1x64xf32, #tpu.memory_space<vmem>>, vector<8x1x64xf32>
    %c0_2 = arith.constant 0 : index
    %c0_3 = arith.constant 0 : index
    %1 = vector.load %arg2[%c0_2, %c0_3] : memref<8x64xf32, #tpu.memory_space<vmem>>, vector<8x64xf32>
    %2 = vector.shape_cast %1 : vector<8x64xf32> to vector<8x1x64xf32>
    %3 = arith.addf %0, %2 : vector<8x1x64xf32>
    %c0_4 = arith.constant 0 : index
    %c0_5 = arith.constant 0 : index
    %c0_6 = arith.constant 0 : index
    %4 = vector.load %arg3[%c0_4, %c0_5, %c0_6] : memref<8x1x64xf32, #tpu.memory_space<vmem>>, vector<8x1x64xf32>
    tpu.vector_store %arg3[%c0_4, %c0_5, %c0_6], %3 {strides = array<i32>} : memref<8x1x64xf32, #tpu.memory_space<vmem>>, vector<8x1x64xf32>,
    return
  }
  func.func @transform_0(%arg0: i32) -> (i32, i32, i32) {
    %c0_i32 = arith.constant 0 : i32
    %c0_i32_0 = arith.constant 0 : i32
    %c0_i32_1 = arith.constant 0 : i32
    return %c0_i32, %arg0, %c0_i32_0 : i32, i32, i32
  }
  func.func @transform_1(%arg0: i32) -> (i32, i32) {
    %c0_i32 = arith.constant 0 : i32
    %c0_i32_0 = arith.constant 0 : i32
    %c0_i32_1 = arith.constant 0 : i32
    return %c0_i32, %c0_i32_0 : i32, i32
  }
  func.func @transform_2(%arg0: i32) -> (i32, i32, i32) {
    %c0_i32 = arith.constant 0 : i32
    %c0_i32_0 = arith.constant 0 : i32
    %c0_i32_1 = arith.constant 0 : i32
    return %c0_i32, %arg0, %c0_i32_0 : i32, i32, i32
  }
}

</mosaic_0001>

<bundles_post_ra>
// kernel: tpu_custom_call.1
= control target key start
LH: loop header
LB: loop body
LE: loop exit
PB: predicated region body
PF: predicated region fallthrough
CT: control target
= control target key end

     0   :  { %7 = vsyncpa [#allocation3], 0  ;;  %s289_s0 = inlined_call_operand.hbm [shape: f32[8,1,64], index: 0, kind: input, shape index: {}]   ;;  %s290_s1 = inlined_call_operand.hbm [shape: f32[8,64], index: 1, kind: input, shape index: {}]   ;;  %s291_s2 = inlined_call_operand.hbm [shape: f32[8,1,64], index: 2, kind: output, shape index: {}]  }
   0x1   :  { %8 = vsyncpa [#allocation6], 0 }
   0x2   :  { %9 = vsyncpa [#allocation4], 0  ;;  %s218_s9 = smov [#allocation2]   ;;  %s146_s13 = scalar_lea.hbm %s289_s0, 128 }
   0x3   :  { %s15_s10 = sshll.u32 %s218_s9, 4  ;;  %p147_p0 = scmp.ne.s32.totalorder %s289_s0, %s146_s13  ;;  %s16_s10 = int_to_ptr.vmem [resolvable:$true] %s15_s10 }
   0x4   :  { %p150_p1 = scmp.lt.u32.totalorder %s146_s13, %s289_s0 }
   0x6   :  { %p152_p2 = pnand %p150_p1, %p147_p0 }
   0x8   :  { %155 = shalt.err (!%p152_p2)
}
   0x9   :  { %s156_s18 = scalar_lea.vmem %s16_s10, 128  ;;  %p161_p4 = scmp.lt.s32.totalorder %s16_s10, %s16_s10 }
   0xa   :  { %p157_p3 = scmp.ne.s32.totalorder %s16_s10, %s156_s18  ;;  %p162_p5 = scmp.lt.s32.totalorder %s156_s18, %s156_s18 }
   0xc   :  { %p163_p6 = por %p162_p5, %p161_p4 }
   0xe   :  { %p164_p7 = pnand %p163_p6, %p157_p3 }
  0x10   :  { %167 = shalt.err (!%p164_p7)
}
  0x11   :  { %s219_s19 = smov 16   ;;  %s220_s20 = smov 1  }
  0x12   :  { %21 = dma.hbm_to_vmem [thread:$0]  %s289_s0, 128, %s16_s10, [#allocation3], %s219_s19, %s219_s19, %s220_s20  }
  0x13   :  { %s221_s23 = smov [#allocation5]   ;;  %s168_s27 = scalar_lea.hbm %s290_s1, 128 }
  0x14   :  { %s28_s24 = sshll.u32 %s221_s23, 4  ;;  %p169_p8 = scmp.ne.s32.totalorder %s290_s1, %s168_s27  ;;  %s29_s24 = int_to_ptr.vmem [resolvable:$true] %s28_s24 }
  0x15   :  { %p172_p9 = scmp.lt.u32.totalorder %s168_s27, %s290_s1 }
  0x17   :  { %p174_p10 = pnand %p172_p9, %p169_p8 }
  0x19   :  { %177 = shalt.err (!%p174_p10)
}
  0x1a   :  { %s178_s4 = scalar_lea.vmem %s29_s24, 128  ;;  %p183_p12 = scmp.lt.s32.totalorder %s29_s24, %s29_s24 }
  0x1b   :  { %p179_p11 = scmp.ne.s32.totalorder %s29_s24, %s178_s4  ;;  %p184_p13 = scmp.lt.s32.totalorder %s178_s4, %s178_s4 }
  0x1d   :  { %p185_p0 = por %p184_p13, %p183_p12 }
  0x1f   :  { %p186_p1 = pnand %p185_p0, %p179_p11 }
  0x21   :  { %189 = shalt.err (!%p186_p1)
}
  0x22   :  { %31 = dma.hbm_to_vmem [thread:$0]  %s290_s1, 128, %s29_s24, [#allocation6]  }
  0x23   :  { %212 = dma.done.wait [#allocation3], 128  }
  0x24   :  { %213 = vsyncadd [#allocation3], 4294967168 }
  0x25   :  { %214 = dma.done.wait [#allocation6], 128  }
  0x26   :  { %215 = vsyncadd [#allocation6], 4294967168  ;;  %v52_v0 = vlaneseq  ;;  %v222_v1 = vmov 1966171168   ;;  %v46_v6 = vld [vmem:[#allocation5] sm:$0xff]  ;;  %vm113_vm0 = vcmask 516096  }
  0x27   :  { %v50_v2 = vunpack.c.l.s4 %v222_v1  ;;  %v48_v8 = vcombine.high %v46_v6, %v46_v6  ;;  %v38_v9 = vld [vmem:[#allocation2] sm:$0x1]  ;;  %v39_v13 = vld [vmem:[#allocation2 + $0x1] sm:$0x1]  ;;  %v40_v14 = vld [vmem:[#allocation2 + $0x2] sm:$0x1] }
  0x28   :  { %v53_v3 = vshrl.u32 %v52_v0, 7  ;;  %v42_v15 = vld [vmem:[#allocation2 + $0x4] sm:$0x1]  ;;  %v41_v20 = vld [vmem:[#allocation2 + $0x3] sm:$0x1]  ;;  %s223_s1 = smov [#allocation7]  }
  0x29   :  { %v51_v4 = vunpack.c.0.s8 %v50_v2  ;;  %v43_v26 = vld [vmem:[#allocation2 + $0x5] sm:$0x1]  ;;  %v44_v27 = vld [vmem:[#allocation2 + $0x6] sm:$0x1]  ;;  %v45_v31 = vld [vmem:[#allocation2 + $0x7] sm:$0x1] }
  0x2a   :  { %s127_s6 = sshll.u32 %s223_s1, 4  ;;  %s128_s6 = int_to_ptr.vmem [resolvable:$true] %s127_s6 }
  0x2b   :  { %v54_v5 = vsub.s32 %v51_v4, %v53_v3  ;;  %s190_s7 = scalar_lea.vmem %s128_s6, 128  ;;  %p195_p3 = scmp.lt.s32.totalorder %s128_s6, %s128_s6 }
  0x2c   :  { %p191_p2 = scmp.ne.s32.totalorder %s128_s6, %s190_s7  ;;  %p196_p4 = scmp.lt.s32.totalorder %s190_s7, %s190_s7 }
  0x2d   :  { %v55_v7 = vrot.slane %v46_v6, %v54_v5  ;;  %v62_v12 = vrot.slane %v48_v8, %v54_v5 }
  0x2e   :  { %p197_p5 = por %p196_p4, %p195_p3 }
  0x2f   :  { %v71_v10 = vrot.slane %v55_v7, %v54_v5  ;;  %v63_v11 = vcombine.high %v55_v7, %v55_v7  ;;  %v78_v19 = vrot.slane %v62_v12, %v54_v5  ;;  %v64_v21 = vcombine.high %v62_v12, %v62_v12 }
  0x30   :  { %p198_p6 = pnand %p197_p5, %p191_p2 }
  0x31   :  { %v105_v16 = vadd.f32 %v71_v10, %v38_v9  ;;  %v85_v17 = vrot.slane %v63_v11, %v54_v5  ;;  %v93_v18 = vcombine.high %v71_v10, %v71_v10  ;;  %v109_v25 = vadd.f32 %v78_v19, %v42_v15 }
  0x32   :  { %v92_v28 = vrot.slane %v64_v21, %v54_v5  ;;  %v94_v29 = vcombine.high %v78_v19, %v78_v19 }
  0x33   :  { %114 = vst.msk [vmem:[#allocation7] sm:$0x1] %vm113_vm0, %v105_v16  ;;  %v106_v22 = vadd.f32 %v85_v17, %v39_v13  ;;  %v107_v23 = vadd.f32 %v93_v18, %v40_v14  ;;  %v95_v24 = vcombine.high %v85_v17, %v85_v17  ;;  %118 = vst.msk [vmem:[#allocation7 + $0x4] sm:$0x1] %vm113_vm0, %v109_v25 }
  0x34   :  { %v110_v32 = vadd.f32 %v92_v28, %v43_v26  ;;  %v111_v33 = vadd.f32 %v94_v29, %v44_v27  ;;  %v96_v34 = vcombine.high %v92_v28, %v92_v28 }
  0x35   :  { %115 = vst.msk [vmem:[#allocation7 + $0x1] sm:$0x1] %vm113_vm0, %v106_v22  ;;  %116 = vst.msk [vmem:[#allocation7 + $0x2] sm:$0x1] %vm113_vm0, %v107_v23  ;;  %v108_v30 = vadd.f32 %v95_v24, %v41_v20 }
  0x36   :  { %119 = vst.msk [vmem:[#allocation7 + $0x5] sm:$0x1] %vm113_vm0, %v110_v32  ;;  %120 = vst.msk [vmem:[#allocation7 + $0x6] sm:$0x1] %vm113_vm0, %v111_v33  ;;  %v112_v35 = vadd.f32 %v96_v34, %v45_v31 }
  0x37   :  { %117 = vst.msk [vmem:[#allocation7 + $0x3] sm:$0x1] %vm113_vm0, %v108_v30 }
  0x38   :  { %121 = vst.msk [vmem:[#allocation7 + $0x7] sm:$0x1] %vm113_vm0, %v112_v35 }
  0x39   :  { %201 = shalt.err (!%p198_p6)
}
  0x3a   :  { %s202_s10 = scalar_lea.hbm %s291_s2, 128 }
  0x3b   :  { %p203_p7 = scmp.ne.s32.totalorder %s291_s2, %s202_s10  ;;  %p206_p8 = scmp.lt.u32.totalorder %s202_s10, %s291_s2 }
  0x3d   :  { %p208_p9 = pnand %p206_p8, %p203_p7 }
  0x3f   :  { %211 = shalt.err (!%p208_p9)
}
  0x40   :  { %133 = dma.vmem_to_hbm [thread:$0]  %s128_s6, 128, %s291_s2, [#allocation4], %s219_s19, %s219_s19, %s220_s20  }
  0x41   :  { %216 = dma.done.wait [#allocation4], 128  }
  0x42   :  { %217 = vsyncadd [#allocation4], 4294967168 }
  0x43   :  { %137 = vsyncpa [#allocation3], 1 }
  0x44   :  { %138 = vsyncpa [#allocation6], 1 }
  0x45   :  { %139 = vsyncpa [#allocation4], 1 }

</bundles_post_ra>
